<compile_context>
chip_gen: v5e
topology: v5e:2x2
jax: 0.10.0
libtpu: 0.0.40
codegen_flags: <defaults>
</compile_context>

<pallas_src>
import math
import random
import functools

import jax
import jax.numpy as jnp
from jax import lax
from jax.experimental import pallas as pl
from jax.experimental.pallas import tpu as pltpu

NUM_AUDIO_TOKENS = 1024
NUM_TEXT_TOKENS = 128
NEG_INF = -1e30


def _tpu_tuning():
    """Per-generation row-tile / scoped-VMEM choice (v5e/v6e: big VMEM -> 512 rows)."""
    tile, vmem = 256, 48 * 1024 * 1024          # v7x-safe defaults (64 MiB physical VMEM)
    try:
        info = pltpu.get_tpu_info()
        if getattr(info, "vmem_capacity_bytes", 0) >= 100 * 1024 * 1024:
            tile, vmem = 512, 64 * 1024 * 1024  # v5e / v6e: 128 MiB physical VMEM
    except Exception:
        pass
    return tile, vmem


TILE_ROWS, VMEM_LIMIT = _tpu_tuning()


# ------------------------------- helpers ------------------------------------

def _round_up(x, m):
    return ((x + m - 1) // m) * m


def _grid_rows(M, max_tile=None):
    """Pick a row tile (multiple of 8) and the padded row count."""
    if max_tile is None:
        max_tile = TILE_ROWS
    Mp = _round_up(M, 8)
    tile = min(max_tile, Mp)
    Mp = _round_up(Mp, tile)
    return Mp, tile


def _pad_rows(x, Mp):
    M = x.shape[0]
    if Mp == M:
        return x
    return jnp.pad(x, ((0, Mp - M), (0, 0)))


def _cparams(semantics):
    return pltpu.CompilerParams(dimension_semantics=semantics,
                                vmem_limit_bytes=VMEM_LIMIT)


# ----------------------------- Pallas kernels -------------------------------

def _linear_kernel(x_ref, w_ref, b_ref, o_ref):
    o_ref[...] = (jnp.dot(x_ref[...], w_ref[...], preferred_element_type=jnp.float32)
                  + b_ref[...]).astype(o_ref.dtype)


def pallas_linear(x, w, b):
    """x: (M,K) bf16, w: (K,N) bf16 (resident), b: (1,N) f32 -> (M,N) bf16. Tiled over M."""
    M, K = x.shape
    N = w.shape[1]
    Mp, tm = _grid_rows(M)
    xp = _pad_rows(x.astype(jnp.bfloat16), Mp)
    out = pl.pallas_call(
        _linear_kernel,
        grid=(Mp // tm,),
        in_specs=[pl.BlockSpec((tm, K), lambda i: (i, 0)),
                  pl.BlockSpec((K, N), lambda i: (0, 0)),
                  pl.BlockSpec((1, N), lambda i: (0, 0))],
        out_specs=pl.BlockSpec((tm, N), lambda i: (i, 0)),
        out_shape=jax.ShapeDtypeStruct((Mp, N), jnp.bfloat16),
        compiler_params=_cparams(("parallel",)),
    )(xp, w, b)
    return out[:M]


def _linear_res_ln_kernel(x_ref, res_ref, w_ref, b_ref, g_ref, beta_ref, o_ref, *, eps):
    """LayerNorm(res + (x @ W + b))  — fused out-projection + residual + LN (f32 stats)."""
    h = jnp.dot(x_ref[...], w_ref[...], preferred_element_type=jnp.float32) + b_ref[...]
    z = h + res_ref[...].astype(jnp.float32)
    mu = jnp.mean(z, axis=-1, keepdims=True)
    zc = z - mu
    var = jnp.mean(zc * zc, axis=-1, keepdims=True)
    o_ref[...] = (zc * lax.rsqrt(var + eps) * g_ref[...] + beta_ref[...]).astype(o_ref.dtype)


def pallas_linear_res_ln(x, res, w, b, g, beta, eps=1e-5):
    M, K = x.shape
    D = w.shape[1]
    Mp, tm = _grid_rows(M)
    xp = _pad_rows(x.astype(jnp.bfloat16), Mp)
    rp = _pad_rows(res.astype(jnp.bfloat16), Mp)
    out = pl.pallas_call(
        functools.partial(_linear_res_ln_kernel, eps=eps),
        grid=(Mp // tm,),
        in_specs=[pl.BlockSpec((tm, K), lambda i: (i, 0)),
                  pl.BlockSpec((tm, D), lambda i: (i, 0)),
                  pl.BlockSpec((K, D), lambda i: (0, 0)),
                  pl.BlockSpec((1, D), lambda i: (0, 0)),
                  pl.BlockSpec((1, D), lambda i: (0, 0)),
                  pl.BlockSpec((1, D), lambda i: (0, 0))],
        out_specs=pl.BlockSpec((tm, D), lambda i: (i, 0)),
        out_shape=jax.ShapeDtypeStruct((Mp, D), jnp.bfloat16),
        compiler_params=_cparams(("parallel",)),
    )(xp, rp, w, b, g, beta)
    return out[:M]


def _ffn_res_ln_kernel(x_ref, w1_ref, b1_ref, w2_ref, b2_ref, g_ref, beta_ref, o_ref, *, eps):
    """LayerNorm(x + W2 @ relu(W1 @ x + b1) + b2) — fused FFN + residual + LN."""
    x = x_ref[...]                                              # bf16, loaded once
    h = jnp.dot(x, w1_ref[...], preferred_element_type=jnp.float32) + b1_ref[...]
    h = jnp.maximum(h, 0.0).astype(jnp.bfloat16)
    y = jnp.dot(h, w2_ref[...], preferred_element_type=jnp.float32) + b2_ref[...]
    z = y + x.astype(jnp.float32)
    mu = jnp.mean(z, axis=-1, keepdims=True)
    zc = z - mu
    var = jnp.mean(zc * zc, axis=-1, keepdims=True)
    o_ref[...] = (zc * lax.rsqrt(var + eps) * g_ref[...] + beta_ref[...]).astype(o_ref.dtype)


def pallas_ffn_res_ln(x, w1, b1, w2, b2, g, beta, eps=1e-5):
    M, D = x.shape
    H = w1.shape[1]
    Mp, tm = _grid_rows(M)
    xp = _pad_rows(x.astype(jnp.bfloat16), Mp)
    out = pl.pallas_call(
        functools.partial(_ffn_res_ln_kernel, eps=eps),
        grid=(Mp // tm,),
        in_specs=[pl.BlockSpec((tm, D), lambda i: (i, 0)),
                  pl.BlockSpec((D, H), lambda i: (0, 0)),
                  pl.BlockSpec((1, H), lambda i: (0, 0)),
                  pl.BlockSpec((H, D), lambda i: (0, 0)),
                  pl.BlockSpec((1, D), lambda i: (0, 0)),
                  pl.BlockSpec((1, D), lambda i: (0, 0)),
                  pl.BlockSpec((1, D), lambda i: (0, 0))],
        out_specs=pl.BlockSpec((tm, D), lambda i: (i, 0)),
        out_shape=jax.ShapeDtypeStruct((Mp, D), jnp.bfloat16),
        compiler_params=_cparams(("parallel",)),
    )(xp, w1, b1, w2, b2, g, beta)
    return out[:M]


def _attn_kernel(qkv_ref, mb_ref, pb_ref, o_ref, *, nhead, d_model, scale):
    """One batch element per program.  qkv_ref: (1, L, 3D) bf16 straight from the
    in-projection; bias rebuilt in-kernel from the (L, L) attn-mask + (1, L) padding
    row; output written lane-dense as (1, L, D) with heads folded into features."""
    Dh = d_model // nhead
    qkv = qkv_ref[0]                                    # (L, 3D) bf16
    bias = mb_ref[...] + pb_ref[0]                      # (L, L) f32
    for h in range(nhead):
        q = qkv[:, h * Dh:(h + 1) * Dh]
        k = qkv[:, d_model + h * Dh: d_model + (h + 1) * Dh]
        v = qkv[:, 2 * d_model + h * Dh: 2 * d_model + (h + 1) * Dh]
        s = lax.dot_general(q, k, (((1,), (1,)), ((), ())),
                            preferred_element_type=jnp.float32) * scale + bias
        m = jnp.max(s, axis=-1, keepdims=True)
        e = jnp.exp(s - m)
        inv = pl.reciprocal(jnp.sum(e, axis=-1, keepdims=True), approx=True)
        p = (e * inv).astype(jnp.bfloat16)
        o = jnp.dot(p, v, preferred_element_type=jnp.float32)
        o_ref[0, :, h * Dh:(h + 1) * Dh] = o.astype(o_ref.dtype)


def pallas_attention(qkv, mask_bias, pad_bias, *, nhead, scale):
    """qkv: (N, L, 3D) bf16; mask_bias: (L, L) f32 additive; pad_bias: (N, 1, L) f32
    additive -> (N, L, D) bf16 with heads folded back into the feature axis."""
    N, L, threeD = qkv.shape
    D = threeD // 3
    return pl.pallas_call(
        functools.partial(_attn_kernel, nhead=nhead, d_model=D, scale=scale),
        grid=(N,),
        in_specs=[pl.BlockSpec((1, L, threeD), lambda i: (i, 0, 0)),
                  pl.BlockSpec((L, L), lambda i: (0, 0)),
                  pl.BlockSpec((1, 1, L), lambda i: (i, 0, 0))],
        out_specs=pl.BlockSpec((1, L, D), lambda i: (i, 0, 0)),
        out_shape=jax.ShapeDtypeStruct((N, L, D), jnp.bfloat16),
        compiler_params=_cparams(("parallel",)),
    )(qkv.astype(jnp.bfloat16), mask_bias, pad_bias)


def _linear_ce_kernel(x_ref, w_ref, b_ref, tgt_ref, valid_ref, loss_ref):
    """Fused predict-head matmul + cross entropy; per-row losses (parallel grid)."""
    logits = jnp.dot(x_ref[...], w_ref[...], preferred_element_type=jnp.float32) + b_ref[...]
    m = jnp.max(logits, axis=-1, keepdims=True)
    lse = jnp.log(jnp.sum(jnp.exp(logits - m), axis=-1, keepdims=True)) + m
    t = tgt_ref[...]                                    # (tm, 1) int32
    iota = lax.broadcasted_iota(jnp.int32, logits.shape, 1)
    tgt_logit = jnp.sum(jnp.where(iota == t, logits, 0.0), axis=-1, keepdims=True)
    loss_ref[...] = (lse - tgt_logit) * valid_ref[...]


def pallas_linear_ce_sum(x, w, b, targets, valid):
    """x: (M,K) bf16; w: (K,Vpad) bf16; b: (1,Vpad) f32 (NEG_INF on padded vocab lanes);
    targets: (M,) int; valid: (M,) f32. Returns summed cross-entropy (scalar)."""
    M, K = x.shape
    Vpad = w.shape[1]
    Mp, tm = _grid_rows(M)
    xp = _pad_rows(x.astype(jnp.bfloat16), Mp)
    tp = _pad_rows(targets.reshape(M, 1).astype(jnp.int32), Mp)
    vp = _pad_rows(valid.reshape(M, 1).astype(jnp.float32), Mp)   # padded rows -> valid=0
    per_row = pl.pallas_call(
        _linear_ce_kernel,
        grid=(Mp // tm,),
        in_specs=[pl.BlockSpec((tm, K), lambda i: (i, 0)),
                  pl.BlockSpec((K, Vpad), lambda i: (0, 0)),
                  pl.BlockSpec((1, Vpad), lambda i: (0, 0)),
                  pl.BlockSpec((tm, 1), lambda i: (i, 0)),
                  pl.BlockSpec((tm, 1), lambda i: (i, 0))],
        out_specs=pl.BlockSpec((tm, 1), lambda i: (i, 0)),
        out_shape=jax.ShapeDtypeStruct((Mp, 1), jnp.float32),
        compiler_params=_cparams(("parallel",)),       # partial sums -> v7x megacore ok
    )(xp, w, b, tp, vp)
    return jnp.sum(per_row)


# ------------------------------- model glue ---------------------------------

def sine_positional_embedding(length, d_model):
    pos = jnp.arange(length, dtype=jnp.float32)[:, None]
    div = jnp.exp(jnp.arange(0, d_model, 2, dtype=jnp.float32)
                  * (-math.log(10000.0) / d_model))
    pe = jnp.zeros((length, d_model), jnp.float32)
    pe = pe.at[:, 0::2].set(jnp.sin(pos * div))
    pe = pe.at[:, 1::2].set(jnp.cos(pos * div))
    return pe


def encoder_layer(x2d, p, mask_bias, pad_bias, N, L, nhead):
    """Post-norm TransformerEncoderLayer (norm_first=False), relu FFN, eval-mode dropout."""
    D = x2d.shape[1]
    Dh = D // nhead
    qkv = pallas_linear(x2d, p['in_proj_w'], p['in_proj_b'])          # (N*L, 3D) bf16
    attn = pallas_attention(qkv.reshape(N, L, 3 * D), mask_bias, pad_bias,
                            nhead=nhead, scale=1.0 / math.sqrt(Dh))   # (N, L, D) bf16
    h = pallas_linear_res_ln(attn.reshape(N * L, D), x2d,
                             p['out_proj_w'], p['out_proj_b'],
                             p['ln1_g'], p['ln1_b'])                  # out-proj + res + LN
    out = pallas_ffn_res_ln(h, p['lin1_w'], p['lin1_b'], p['lin2_w'], p['lin2_b'],
                            p['ln2_g'], p['ln2_b'])                   # FFN + res + LN
    return out


def encoder_block(x, layers, mask_bias, pad_bias, nhead):
    N, L, D = x.shape
    h = x.reshape(N * L, D).astype(jnp.bfloat16)        # bf16 activation stream
    for p in layers:
        h = encoder_layer(h, p, mask_bias, pad_bias, N, L, nhead)
    return h.reshape(N, L, D)  # final norm is None in the module (norm_first=False)


def init_params(key, d_model, nhead, num_layers):
    """Parameters stored in kernel-ready layout: (in, out) bf16 weights, (1, N) f32 biases,
    predict heads pre-transposed/padded to a 128-multiple vocab."""
    d = d_model
    cnt = [0]

    def nxt():
        cnt[0] += 1
        return jax.random.fold_in(key, cnt[0])

    def nrm(shape, scale=0.02):
        return (scale * jax.random.normal(nxt(), shape)).astype(jnp.float32)

    params = {}
    params['text_emb'] = nrm((NUM_TEXT_TOKENS, d))
    params['audio_emb'] = ([nrm((NUM_AUDIO_TOKENS + 1, d))]
                           + [nrm((NUM_AUDIO_TOKENS, d)) for _ in range(6)])
    params['stage_emb'] = nrm((8, d))  # unused (AdaptiveLayerNorm disabled), kept for parity

    def make_layer():
        return dict(
            in_proj_w=nrm((d, 3 * d)).astype(jnp.bfloat16),
            in_proj_b=jnp.zeros((1, 3 * d), jnp.float32),
            out_proj_w=nrm((d, d)).astype(jnp.bfloat16),
            out_proj_b=jnp.zeros((1, d), jnp.float32),
            ln1_g=jnp.ones((1, d), jnp.float32), ln1_b=jnp.zeros((1, d), jnp.float32),
            lin1_w=nrm((d, 4 * d)).astype(jnp.bfloat16),
            lin1_b=jnp.zeros((1, 4 * d), jnp.float32),
            lin2_w=nrm((4 * d, d)).astype(jnp.bfloat16),
            lin2_b=jnp.zeros((1, d), jnp.float32),
            ln2_g=jnp.ones((1, d), jnp.float32), ln2_b=jnp.zeros((1, d), jnp.float32),
        )

    params['blocks'] = [[make_layer() for _ in range(num_layers)] for _ in range(2)]

    def _round_up_local(x, m):
        return ((x + m - 1) // m) * m

    def make_head(weight_vd):
        V = weight_vd.shape[0]
        Vpad = _round_up_local(V, 128)
        w = weight_vd.T.astype(jnp.bfloat16)                    # (d, V)
        if Vpad != V:
            w = jnp.pad(w, ((0, 0), (0, Vpad - V)))
            b = jnp.concatenate([jnp.zeros((1, V), jnp.float32),
                                 jnp.full((1, Vpad - V), NEG_INF, jnp.float32)], axis=1)
        else:
            b = jnp.zeros((1, V), jnp.float32)
        return dict(w=w, b=b, vocab=V)

    # predict layers with weight tying exactly as in the module
    heads = [make_head(params['audio_emb'][0])]                 # predict[0] <- audio_emb[0]
    for j in range(1, 6):
        heads.append(make_head(params['audio_emb'][j + 1]))     # predict[j] <- audio_emb[j+1]
    heads.append(make_head(nrm((NUM_AUDIO_TOKENS, d))))         # predict[6]
    heads.append(make_head(nrm((NUM_AUDIO_TOKENS, d))))         # predict[7]
    params['predict'] = heads
    return params


def valle_forward(params, x_tok, x_lens, y, y_lens, *, nhead, train_stage):
    N, S = x_tok.shape
    T = y.shape[1]
    L = S + T
    d = params['text_emb'].shape[1]

    x_mask = jnp.arange(S)[None, :] >= x_lens[:, None]   # True = padding
    y_mask = jnp.arange(T)[None, :] >= y_lens[:, None]
    y_mask_int = y_mask.astype(jnp.int32)

    pe = sine_positional_embedding(max(S, T), d)
    x = params['text_emb'][x_tok] + pe[:S][None]          # text embedding + sin pos

    codes = y.astype(jnp.int32) * (1 - y_mask_int[..., None])

    xy_padding_mask = jnp.concatenate([x_mask, y_mask], axis=1)   # (N, S+T)
    pad_bias = jnp.where(xy_padding_mask, NEG_INF, 0.0).astype(jnp.float32)[:, None, :]

    # attention mask built exactly as in the provided source
    x_attn_mask = jnp.zeros((S, S + T), dtype=bool)
    y_causal = jnp.triu(jnp.ones((T, T), dtype=bool), k=1)
    y_attn_mask = jnp.concatenate([jnp.ones((T, S), dtype=bool), y_causal], axis=1)
    xy_attn_mask = jnp.concatenate([x_attn_mask, y_attn_mask], axis=0)  # (S+T, S+T)
    ar_mask_bias = jnp.where(xy_attn_mask, NEG_INF, 0.0).astype(jnp.float32)
    nar_mask_bias = jnp.zeros((L, L), jnp.float32)

    # pad_y_eos
    y0 = (jnp.pad(codes[..., 0], ((0, 0), (0, 1)))
          + NUM_AUDIO_TOKENS * jnp.pad(y_mask_int, ((0, 0), (0, 1)), constant_values=1))
    y_in, ar_targets = y0[:, :-1], y0[:, 1:]

    y_emb = params['audio_emb'][0][y_in]
    y_pos = y_emb + pe[:T][None]
    xy_pos = jnp.concatenate([x, y_pos], axis=1)          # (N, S+T, d)

    # ---- AR block ----
    xy_dec = encoder_block(xy_pos, params['blocks'][0], ar_mask_bias, pad_bias, nhead)
    loss_ar = pallas_linear_ce_sum(xy_dec[:, S:].reshape(N * T, d),
                                   params['predict'][0]['w'], params['predict'][0]['b'],
                                   ar_targets.reshape(-1),
                                   jnp.ones((N * T,), jnp.float32))

    # ---- NAR block ----
    for i in range(train_stage - 1):
        y_pos = y_pos + params['audio_emb'][i + 1][codes[..., i + 1]]
    xy_pos = jnp.concatenate([x, y_pos], axis=1)
    nar_targets = codes[..., train_stage] + NUM_AUDIO_TOKENS * y_mask_int
    xy_dec2 = encoder_block(xy_pos, params['blocks'][1], nar_mask_bias, pad_bias, nhead)
    valid = (nar_targets.reshape(-1) != NUM_AUDIO_TOKENS).astype(jnp.float32)
    loss_nar = pallas_linear_ce_sum(xy_dec2[:, S:].reshape(N * T, d),
                                    params['predict'][train_stage]['w'],
                                    params['predict'][train_stage]['b'],
                                    nar_targets.reshape(-1), valid)

    total_loss = (loss_ar + loss_nar) / 2.0
    return codes, total_loss


if __name__ == "__main__":
    d_model, nhead, num_layers = 32, 4, 2
    N, S, T = 2, 8, 12

    key = jax.random.PRNGKey(0)
    params = init_params(key, d_model, nhead, num_layers)

    k1, k2 = jax.random.split(jax.random.fold_in(key, 9999))
    x_tok = jax.random.randint(k1, (N, S), 0, NUM_TEXT_TOKENS, dtype=jnp.int32)
    y = jax.random.randint(k2, (N, T, 8), 0, NUM_AUDIO_TOKENS, dtype=jnp.int32)
    x_lens = jnp.array([S, S - 2], dtype=jnp.int32)   # max == S (as the module assumes)
    y_lens = jnp.array([T, T - 3], dtype=jnp.int32)   # max == T

    # exact replication of the module's stage sampling: self.rng = random.Random(0)
    train_stage = random.Random(0).choices((1, 2, 3, 4, 5, 6, 7),
                                           weights=[1.0 / 7] * 7, k=1)[0]

    codes, loss = valle_forward(params, x_tok, x_lens, y, y_lens,
                                nhead=nhead, train_stage=train_stage)
    jax.block_until_ready((codes, loss))
    assert codes.shape == (N, T, 8)
    assert bool(jnp.isfinite(loss))
    print("KERNEL_OK")
</pallas_src>

<mosaic_0001>
module attributes {stable_mosaic.version = 11 : i64} {
  func.func @_linear_kernel(%arg0: i32, %arg1: memref<40x32xbf16, #tpu.memory_space<vmem>>, %arg2: memref<32x96xbf16, #tpu.memory_space<vmem>>, %arg3: memref<1x96xf32, #tpu.memory_space<vmem>>, %arg4: memref<40x96xbf16, #tpu.memory_space<vmem>>) attributes {dimension_semantics = [#tpu.dimension_semantics<parallel>], iteration_bounds = array<i64: 1>, scalar_prefetch = 0 : i64, scratch_operands = 0 : i64, tpu.core_type = #tpu.core_type<tc>, window_params = [{transform_indices = @transform_0, window_bounds = array<i64: 40, 32>}, {pipeline_mode = #tpu.pipeline_mode<synchronous>, transform_indices = @transform_1, window_bounds = array<i64: 32, 96>}, {pipeline_mode = #tpu.pipeline_mode<synchronous>, transform_indices = @transform_2, window_bounds = array<i64: 1, 96>}, {transform_indices = @transform_3, window_bounds = array<i64: 40, 96>}]} {
    %c0 = arith.constant 0 : index
    %c0_0 = arith.constant 0 : index
    %0 = vector.load %arg1[%c0, %c0_0] : memref<40x32xbf16, #tpu.memory_space<vmem>>, vector<40x32xbf16>
    %c0_1 = arith.constant 0 : index
    %c0_2 = arith.constant 0 : index
    %1 = vector.load %arg2[%c0_1, %c0_2] : memref<32x96xbf16, #tpu.memory_space<vmem>>, vector<32x96xbf16>
    %cst = arith.constant dense<0.000000e+00> : vector<40x96xf32>
    %2 = tpu.matmul %0, %1, %cst {dimension_numbers = #tpu.dot_dimension_numbers<[1], [0], [0], [1], [0, 0, 1, 1], [], []>} : vector<40x32xbf16>, vector<32x96xbf16>, vector<40x96xf32> -> vector<40x96xf32>
    %c0_3 = arith.constant 0 : index
    %c0_4 = arith.constant 0 : index
    %3 = vector.load %arg3[%c0_3, %c0_4] : memref<1x96xf32, #tpu.memory_space<vmem>>, vector<1x96xf32>
    %4 = vector.broadcast %3 : vector<1x96xf32> to vector<40x96xf32>
    %5 = arith.addf %2, %4 : vector<40x96xf32>
    %6 = arith.truncf %5 : vector<40x96xf32> to vector<40x96xbf16>
    %c0_5 = arith.constant 0 : index
    %c0_6 = arith.constant 0 : index
    %7 = vector.load %arg4[%c0_5, %c0_6] : memref<40x96xbf16, #tpu.memory_space<vmem>>, vector<40x96xbf16>
    tpu.vector_store %arg4[%c0_5, %c0_6], %6 {strides = array<i32>} : memref<40x96xbf16, #tpu.memory_space<vmem>>, vector<40x96xbf16>,
    return
  }
  func.func @transform_0(%arg0: i32) -> (i32, i32) {
    %c0_i32 = arith.constant 0 : i32
    %c0_i32_0 = arith.constant 0 : i32
    return %arg0, %c0_i32 : i32, i32
  }
  func.func @transform_1(%arg0: i32) -> (i32, i32) {
    %c0_i32 = arith.constant 0 : i32
    %c0_i32_0 = arith.constant 0 : i32
    %c0_i32_1 = arith.constant 0 : i32
    return %c0_i32, %c0_i32_0 : i32, i32
  }
  func.func @transform_2(%arg0: i32) -> (i32, i32) {
    %c0_i32 = arith.constant 0 : i32
    %c0_i32_0 = arith.constant 0 : i32
    %c0_i32_1 = arith.constant 0 : i32
    return %c0_i32, %c0_i32_0 : i32, i32
  }
  func.func @transform_3(%arg0: i32) -> (i32, i32) {
    %c0_i32 = arith.constant 0 : i32
    %c0_i32_0 = arith.constant 0 : i32
    return %arg0, %c0_i32 : i32, i32
  }
}

</mosaic_0001>

<bundles_post_ra>
// kernel: tpu_custom_call.1
= control target key start
LH: loop header
LB: loop body
LE: loop exit
PB: predicated region body
PF: predicated region fallthrough
CT: control target
= control target key end

     0   :  { %s222_s0 = inlined_call_operand.vmem [shape: bf16[40,32], index: 0, kind: input, shape index: {}]   ;;  %s223_s1 = inlined_call_operand.vmem [shape: bf16[32,96], index: 1, kind: input, shape index: {}]   ;;  %s224_s2 = inlined_call_operand.vmem [shape: f32[1,96], index: 2, kind: input, shape index: {}]   ;;  %s225_s3 = inlined_call_operand.hbm [shape: bf16[40,96], index: 3, kind: output, shape index: {}]  }
   0x1   :  { %v138_v0 = vld [vmem:[%s223_s1 + $0x8] sm:$0xff]  ;;  %v20_v1 = vld [vmem:[%s222_s0 + $0x10] sm:$0xf]  ;;  %v137_v2 = vld [vmem:[%s223_s1] sm:$0xff] }
   0x2   :  { %70 = vmatpush.bf16.msra.mxu0 %v138_v0  ;;  %139 = vmatpush.bf16.msra.mxu1 %v138_v0  ;;  %v38_v3 = vunpack.c.l.b16 %v20_v1 }
   0x3   :  { %8 = vsyncpa [#allocation3], 0  ;;  %140 = vmatpush.bf16.msra.mxu2 %v138_v0  ;;  %v135_v4 = vld [vmem:[%s222_s0] sm:$0xff]  ;;  %v136_v5 = vld [vmem:[%s222_s0 + $0x8] sm:$0xff]  ;;  %vm54_vm0 = vcmask 261120   ;;  %vm92_vm1 = vcmask 781312  }
   0x4   :  { %v41_v6 = vpack.c.b16 %v38_v3, %v38_v3  ;;  %v146_v7 = vld [vmem:[%s224_s2] ss:$0 sm:$0xff]  ;;  %s173_s0 = smov [#allocation2]   ;;  %s104_s2 = sshll.u32 %s225_s3, 4  ;;  %s105_s2 = int_to_ptr.hbm [resolvable:$true] %s104_s2 }
   0x5   :  { %s102_s23 = sshll.u32 %s173_s0, 4  ;;  %s174_s26 = smov 64   ;;  %s103_s23 = int_to_ptr.vmem [resolvable:$true] %s102_s23 }
   0x6   :  { %71 = vmatpush.bf16.msra.mxu0 %v137_v2  ;;  %141 = vmatpush.bf16.msra.mxu1 %v137_v2  ;;  %s175_s27 = smov 4  }
   0x7   :  { %142 = vmatpush.bf16.msra.mxu2 %v137_v2 }
   0x9   :  { %132 = vmatmul.msk.bf16.vlgmr.msra.gmra.mxu0 %vm54_vm0, %v135_v4  ;;  %133 = vmatmul.msk.bf16.vlgmr.msra.gmra.mxu1 %vm54_vm0, %v136_v5 }
   0xa   :  { %134 = vmatmul.msk.bf16.vlgmr.msra.gmra.mxu2 %vm54_vm0, %v41_v6 }
  0x86   :  { %v73_v8 = vpop.f32.mrf.mxu0  ;;  %v78_v9 = vpop.f32.mrf.mxu1 }
  0x87   :  { %v74_v10 = vadd.f32 %v146_v7, %v73_v8  ;;  %v79_v11 = vadd.f32 %v146_v7, %v78_v9 }
  0x89   :  { %v87_v12 = vpack.c.bf16 %v74_v10, %v74_v10  ;;  %v89_v13 = vpack.c.bf16 %v79_v11, %v79_v11 }
  0x8b   :  { %93 = vst.msk [vmem:[#allocation2] sm:$0xf] %vm92_vm1, %v87_v12 }
  0x8c   :  { %95 = vst.msk [vmem:[#allocation2 + $0x8] sm:$0xf] %vm92_vm1, %v89_v13 }
  0x8d   :  { %v83_v14 = vpop.f32.mrf.mxu2 }
  0x8e   :  { %v84_v15 = vadd.f32 %v146_v7, %v83_v14  ;;  %v75_v16 = vpop.f32.mrf.mxu0  ;;  %v80_v17 = vpop.f32.mrf.mxu1 }
  0x8f   :  { %v76_v18 = vadd.f32 %v146_v7, %v75_v16  ;;  %v81_v19 = vadd.f32 %v146_v7, %v80_v17 }
  0x90   :  { %v91_v20 = vpack.c.bf16 %v84_v15, %v84_v15 }
  0x91   :  { %v88_v21 = vpack.c.bf16 %v76_v18, %v76_v18  ;;  %v90_v22 = vpack.c.bf16 %v81_v19, %v81_v19 }
  0x92   :  { %97 = vst.msk [vmem:[#allocation2 + $0x10] sm:$0xf] %vm92_vm1, %v91_v20 }
  0x93   :  { %94 = vst.msk [vmem:[#allocation2 + $0x4] sm:$0xf] %vm92_vm1, %v88_v21 }
  0x94   :  { %96 = vst.msk [vmem:[#allocation2 + $0xc] sm:$0xf] %vm92_vm1, %v90_v22 }
  0x95   :  { %v85_v23 = vpop.f32.mrf.mxu2  ;;  %110 = dma.vmem_to_hbm [thread:$0]  %s103_s23, 320, %s105_s2, [#allocation3], %s174_s26, %s174_s26, %s175_s27  }
  0x96   :  { %171 = dma.done.wait [#allocation3], 320  }
  0x97   :  { %172 = vsyncadd [#allocation3], 4294966976 }
  0x98   :  { %115 = vsyncpa [#allocation3], 1 }

</bundles_post_ra>
